<compile_context>
chip_gen: v7x
topology: tpu7x:2x2x1
jax: 0.10.0
libtpu: 0.0.40
codegen_flags: <defaults>
</compile_context>

<pallas_src>
import jax
import jax.numpy as jnp
from jax import lax
from jax.experimental import pallas as pl
from jax.experimental.pallas import tpu as pltpu


def linear_sub_kernel(y_ref, x_ref, w_ref, b_ref, o_ref):
    # y_ref lives in SMEM (scalar); the rest are whole-array VMEM refs.
    corr = b_ref[...] - y_ref[0]          # (1, OUT): fused bias - y1, one VPU pass
    # x: (B, IN) @ w: (OUT, IN) contracting on IN (trans_b matmul on the MXU).
    acc = lax.dot_general(
        x_ref[...], w_ref[...],
        dimension_numbers=(((1,), (1,)), ((), ())),
        preferred_element_type=jnp.float32)          # (B, OUT)
    o_ref[...] = (acc + corr).astype(o_ref.dtype)


def linear_sub(x, w, b, y):
    """x: (B, IN) f32, w: (OUT, IN) f32 (PyTorch layout), b: (1, OUT) f32, y: (1,) f32."""
    B, IN = x.shape
    OUT = w.shape[0]
    bytes_accessed = 4 * (x.size + w.size + b.size + y.size + B * OUT)
    return pl.pallas_call(
        linear_sub_kernel,
        out_shape=jax.ShapeDtypeStruct((B, OUT), jnp.float32),
        # No grid: single invocation, whole arrays as blocks -> no pipeline
        # bookkeeping or double-buffering for this tiny (~33 KiB) kernel.
        in_specs=[
            pl.BlockSpec(memory_space=pltpu.SMEM),   # y1 scalar
            pl.BlockSpec(memory_space=pltpu.VMEM),   # x      (B, IN)
            pl.BlockSpec(memory_space=pltpu.VMEM),   # W      (OUT, IN)
            pl.BlockSpec(memory_space=pltpu.VMEM),   # bias   (1, OUT)
        ],
        out_specs=pl.BlockSpec(memory_space=pltpu.VMEM),
        cost_estimate=pl.CostEstimate(
            flops=2 * B * IN * OUT,
            transcendentals=0,
            bytes_accessed=bytes_accessed),
    )(y, x, w, b)


if __name__ == "__main__":
    IN_FEATURES, OUT_FEATURES, BATCH = 64, 128, 1

    key = jax.random.PRNGKey(0)
    k_x, k_y, k_w, k_b = jax.random.split(key, 4)

    # Inputs (matching the PyTorch shapes: x1=(1,64), y1=(1,))
    x1 = jax.random.normal(k_x, (BATCH, IN_FEATURES), dtype=jnp.float32)
    y1 = jax.random.normal(k_y, (1,), dtype=jnp.float32)

    # Deterministic "Linear(64, 128)" params (PyTorch weight layout: (out, in)).
    bound = 1.0 / (IN_FEATURES ** 0.5)
    weight = jax.random.uniform(
        k_w, (OUT_FEATURES, IN_FEATURES), minval=-bound, maxval=bound,
        dtype=jnp.float32)
    bias = jax.random.uniform(
        k_b, (OUT_FEATURES,), minval=-bound, maxval=bound, dtype=jnp.float32)

    out = linear_sub(x1, weight, bias.reshape(1, OUT_FEATURES), y1)
    out = jax.block_until_ready(out)

    # Reference check in plain JAX
    ref = (x1 @ weight.T + bias) - y1
    assert out.shape == (BATCH, OUT_FEATURES)
    assert jnp.allclose(out, ref, atol=1e-5, rtol=1e-5)

    print("KERNEL_OK")
</pallas_src>

<mosaic_0001>
module attributes {stable_mosaic.version = 11 : i64} {
  func.func @linear_sub_kernel(%arg0: memref<1xf32, #tpu.memory_space<smem>>, %arg1: memref<1x64xf32, #tpu.memory_space<vmem>>, %arg2: memref<128x64xf32, #tpu.memory_space<vmem>>, %arg3: memref<1x128xf32, #tpu.memory_space<vmem>>, %arg4: memref<1x128xf32, #tpu.memory_space<vmem>>) attributes {dimension_semantics = [], scalar_prefetch = 0 : i64, scratch_operands = 0 : i64, tpu.core_type = #tpu.core_type<tc>} {
    %c0 = arith.constant 0 : index
    %c0_0 = arith.constant 0 : index
    %0 = vector.load %arg3[%c0, %c0_0] : memref<1x128xf32, #tpu.memory_space<vmem>>, vector<1x128xf32>
    %c0_1 = arith.constant 0 : index
    %1 = memref.load %arg0[%c0_1] : memref<1xf32, #tpu.memory_space<smem>>
    %2 = vector.broadcast %1 : f32 to vector<1x128xf32>
    %3 = arith.subf %0, %2 : vector<1x128xf32>
    %c0_2 = arith.constant 0 : index
    %c0_3 = arith.constant 0 : index
    %4 = vector.load %arg1[%c0_2, %c0_3] : memref<1x64xf32, #tpu.memory_space<vmem>>, vector<1x64xf32>
    %c0_4 = arith.constant 0 : index
    %c0_5 = arith.constant 0 : index
    %5 = vector.load %arg2[%c0_4, %c0_5] : memref<128x64xf32, #tpu.memory_space<vmem>>, vector<128x64xf32>
    %cst = arith.constant dense<0.000000e+00> : vector<1x128xf32>
    %6 = tpu.matmul %4, %5, %cst {dimension_numbers = #tpu.dot_dimension_numbers<[1], [1], [0], [0], [0, 0, 1, 0], [], []>} : vector<1x64xf32>, vector<128x64xf32>, vector<1x128xf32> -> vector<1x128xf32>
    %7 = arith.addf %6, %3 : vector<1x128xf32>
    %c0_6 = arith.constant 0 : index
    %c0_7 = arith.constant 0 : index
    %8 = vector.load %arg4[%c0_6, %c0_7] : memref<1x128xf32, #tpu.memory_space<vmem>>, vector<1x128xf32>
    tpu.vector_store %arg4[%c0_6, %c0_7], %7 {strides = array<i32>} : memref<1x128xf32, #tpu.memory_space<vmem>>, vector<1x128xf32>,
    return
  }
}

</mosaic_0001>

<bundles_post_ra>
// kernel: tpu_custom_call.1
= control target key start
LH: loop header
LB: loop body
LE: loop exit
PB: predicated region body
PF: predicated region fallthrough
CT: control target
= control target key end

     0   :  { %vm40_vm0 = vcmask 523264   ;;  %v306_v2 = vmov 0.0|0.0   ;;  %vm307_vm2 = vmmov 0   ;;  %v308_v5 = vmov 0.0   ;;  %s427_s0 = inlined_call_operand.<no memory space> [shape: f32[1], index: 0, kind: input, shape index: {}]   ;;  %s428_s1 = inlined_call_operand.vmem [shape: f32[1,64], index: 1, kind: input, shape index: {}]   ;;  %s429_s2 = inlined_call_operand.vmem [shape: f32[128,64], index: 2, kind: input, shape index: {}]   ;;  %s430_s3 = inlined_call_operand.vmem [shape: f32[1,128], index: 3, kind: input, shape index: {}]   ;;  %s431_s4 = inlined_call_operand.hbm [shape: f32[1,128], index: 4, kind: output, shape index: {}]  }
   0x1   :  { %v24_v0 = vld [vmem:[%s429_s2] sm:$0xff]  ;;  %v25_v1 = vld [vmem:[%s429_s2 + $0x8] sm:$0xff]  ;;  %246 = vmatprep.subr.bf16.mxu0 %v306_v2  ;;  %vm343_vm1 = vmpackc.low %vm40_vm0, %vm40_vm0  ;;  %243 = vmatprep.mubr.msk.f32.mxu0 %vm307_vm2, %v308_v5 }
   0x2   :  { %v247_v3 = vpack.c.bf16 %v25_v1, %v24_v0  ;;  %v26_v6 = vld [vmem:[%s429_s2 + $0x10] sm:$0xff]  ;;  %v27_v7 = vld [vmem:[%s429_s2 + $0x18] sm:$0xff] }
   0x4   :  { %249 = vmatpush3.bf16.xpose.msk.msra.mxu0 %vm343_vm1, %v247_v3 }
   0x5   :  { %250 = vmatprep.subr.bf16.mxu0 %v306_v2 }
   0x6   :  { %10 = vsyncpa [#allocation4], 0  ;;  %v251_v8 = vpack.c.bf16 %v27_v7, %v26_v6  ;;  %v28_v9 = vld [vmem:[%s429_s2 + $0x20] sm:$0xff]  ;;  %v29_v10 = vld [vmem:[%s429_s2 + $0x28] sm:$0xff]  ;;  %v21_v29 = vstv %s427_s0 }
   0x7   :  { %v255_v11 = vpack.c.bf16 %v29_v10, %v28_v9  ;;  %v30_v12 = vld [vmem:[%s429_s2 + $0x30] sm:$0xff]  ;;  %v31_v13 = vld [vmem:[%s429_s2 + $0x38] sm:$0xff]  ;;  %v32_v15 = vld [vmem:[%s429_s2 + $0x40] sm:$0xff] }
   0x8   :  { %v259_v14 = vpack.c.bf16 %v31_v13, %v30_v12  ;;  %v33_v16 = vld [vmem:[%s429_s2 + $0x48] sm:$0xff]  ;;  %v34_v18 = vld [vmem:[%s429_s2 + $0x50] sm:$0xff]  ;;  %v35_v19 = vld [vmem:[%s429_s2 + $0x58] sm:$0xff] }
   0x9   :  { %v263_v17 = vpack.c.bf16 %v33_v16, %v32_v15  ;;  %v267_v20 = vpack.c.bf16 %v35_v19, %v34_v18  ;;  %v36_v21 = vld [vmem:[%s429_s2 + $0x60] sm:$0xff]  ;;  %v37_v22 = vld [vmem:[%s429_s2 + $0x68] sm:$0xff]  ;;  %v38_v24 = vld [vmem:[%s429_s2 + $0x70] sm:$0xff] }
   0xa   :  { %v271_v23 = vpack.c.bf16 %v37_v22, %v36_v21  ;;  %v39_v25 = vld [vmem:[%s429_s2 + $0x78] sm:$0xff]  ;;  %v23_v27 = vld [vmem:[%s428_s1] sm:$0x1]  ;;  %s309_s2 = smov [#allocation3]  }
   0xb   :  { %v275_v26 = vpack.c.bf16 %v39_v25, %v38_v24  ;;  %v19_v28 = vld [vmem:[%s430_s3] sm:$0x1]  ;;  %s169_s27 = sshll.u32 %s309_s2, 4  ;;  %s170_s27 = int_to_ptr.vmem [resolvable:$true] %s169_s27 }
   0xc   :  { %253 = vmatpush3.bf16.xpose.msk.msra.mxu0 %vm343_vm1, %v251_v8  ;;  %v22_v30 = vsub.f32 %v19_v28, %v21_v29  ;;  %s282_s28 = scalar_lea.vmem %s170_s27, 16  ;;  %s286_s1 = scalar_lea.vmem %s170_s27, 32 }
   0xd   :  { %254 = vmatprep.subr.bf16.mxu0 %v306_v2  ;;  %p283_p0 = scmp.ne.s32.totalorder %s170_s27, %s282_s28  ;;  %p287_p1 = scmp.lt.s32.totalorder %s170_s27, %s170_s27 }
   0xe   :  { %p288_p2 = scmp.lt.s32.totalorder %s286_s1, %s282_s28 }
  0x10   :  { %p289_p3 = por %p288_p2, %p287_p1 }
  0x12   :  { %p290_p4 = pnand %p289_p3, %p283_p0 }
  0x14   :  { %257 = vmatpush3.bf16.xpose.msk.msra.mxu0 %vm343_vm1, %v255_v11 }
  0x15   :  { %258 = vmatprep.subr.bf16.mxu0 %v306_v2 }
  0x1c   :  { %261 = vmatpush3.bf16.xpose.msk.msra.mxu0 %vm343_vm1, %v259_v14 }
  0x1d   :  { %262 = vmatprep.subr.bf16.mxu0 %v306_v2 }
  0x24   :  { %265 = vmatpush3.bf16.xpose.msk.msra.mxu0 %vm343_vm1, %v263_v17 }
  0x25   :  { %266 = vmatprep.subr.bf16.mxu0 %v306_v2 }
  0x2c   :  { %269 = vmatpush3.bf16.xpose.msk.msra.mxu0 %vm343_vm1, %v267_v20 }
  0x2d   :  { %270 = vmatprep.subr.bf16.mxu0 %v306_v2 }
  0x34   :  { %273 = vmatpush3.bf16.xpose.msk.msra.mxu0 %vm343_vm1, %v271_v23 }
  0x35   :  { %274 = vmatprep.subr.bf16.mxu0 %v306_v2 }
  0x3c   :  { %277 = vmatpush3.bf16.xpose.msk.msra.mxu0 %vm343_vm1, %v275_v26 }
  0x43   :  { %244 = vmatmul.mubr.msk.f32.vlgmr.msra.gmra.mrb[0].mxu0 %vm40_vm0, %v23_v27 }
 0x116   :  { %v158_v31 = vpop.f32.mrb[0].mxu0 }
 0x117   :  { %v159_v32 = vadd.f32 %v158_v31, %v22_v30  ;;  %v245_v33 = vpop.f32.mrb[1].mxu0 }
 0x119   :  { %162 = vst [vmem:[#allocation3] sm:$0x1] %v159_v32 }
 0x11a   :  { %293 = shalt.err (!%p290_p4)
}
 0x11b   :  { %s294_s0 = scalar_lea.hbm %s431_s4, 16 }
 0x11c   :  { %p295_p5 = scmp.ne.s32.totalorder %s431_s4, %s294_s0  ;;  %p298_p6 = scmp.lt.u32.totalorder %s294_s0, %s431_s4 }
 0x11e   :  { %p300_p7 = pnand %p298_p6, %p295_p5 }
 0x120   :  { %303 = shalt.err (!%p300_p7)
}
 0x121   :  { %172 = dma.vmem_to_hbm [thread:$0]  %s170_s27, 16, %s431_s4, [#allocation4]  }
 0x122   :  { %304 = dma.done.wait [#allocation4], 16  }
 0x123   :  { %305 = vsyncadd [#allocation4], 4294967280 }
 0x124   :  { %176 = vsyncpa [#allocation4], 1 }

</bundles_post_ra>
